<compile_context>
chip_gen: v7x
topology: tpu7x:2x2x1
jax: 0.10.0
libtpu: 0.0.40
codegen_flags: <defaults>
</compile_context>

<pallas_src>
import functools

import numpy as np
import jax
import jax.numpy as jnp
from jax.experimental import pallas as pl
from jax.experimental.pallas import tpu as pltpu

EPS = 1e-5  # nn.BatchNorm2d default eps


def _vmem_limit_bytes():
    """Scoped-VMEM budget derived from the actual chip generation."""
    try:
        cap = int(pltpu.get_tpu_info().vmem_capacity_bytes)
    except Exception:  # conservative fallback if the query is unavailable
        cap = 64 * 1024 * 1024
    return max(16 * 1024 * 1024, min(3 * cap // 4, 96 * 1024 * 1024))


def _sepconv_kernel(x_ref, wtap_ref, pwc_ref, gamma_ref, beta_ref, o_ref, *,
                    shifts):
    """Fused depthwise-3x3 -> BatchNorm (batch stats) -> pointwise-1x1.

    x_ref:     (C, P)        input, channel-major, P = N*H*W on lanes
    wtap_ref:  (9, C, P)     depthwise tap weight * in-bounds (padding) mask
    pwc_ref:   (C, Cout, 1)  pointwise weight columns
    gamma_ref: (C, 1)        BN weight
    beta_ref:  (C, 1)        BN bias
    o_ref:     (Cout, P)     output, channel-major (lane-dense store)
    shifts:    static tuple of 9 lane-roll amounts (one per tap)
    """
    C, P = x_ref.shape
    Cout = o_ref.shape[0]
    x = x_ref[...]

    # --- depthwise 3x3 conv, stride 1, padding 1 ---------------------------
    # Each tap: lane-roll of the flattened batch (XLU) * masked weight (VPU).
    # Out-of-image (padding) contributions are zeroed by the mask folded into
    # wtap, so wrap-around lanes from the roll never contribute.
    acc = jnp.zeros((C, P), jnp.float32)
    for t, s in enumerate(shifts):
        xs = x if s == 0 else pltpu.roll(x, shift=s, axis=1)
        acc = acc + xs * wtap_ref[t]

    # --- BatchNorm2d, training-mode biased batch statistics ----------------
    # True two-pass mean / variance (matches PyTorch numerics; avoids the
    # E[y^2] - E[y]^2 cancellation issue flagged in review).
    inv_count = 1.0 / P
    mean = jnp.sum(acc, axis=1, keepdims=True) * inv_count              # (C,1)
    var = jnp.sum((acc - mean) ** 2, axis=1, keepdims=True) * inv_count  # (C,1)
    scale = gamma_ref[...] * jax.lax.rsqrt(var + EPS)                   # (C,1)
    shift = beta_ref[...] - mean * scale
    y = acc * scale + shift                                             # (C,P)

    # --- pointwise 1x1 conv -------------------------------------------------
    # Tiny C: a (P,C)@(C,Cout) matmul would run the 256-wide MXU at a few
    # percent utilization; a C-step lane-dense VPU FMA chain is cheaper.
    # TODO(synk): for C >~ 32 switch to a bf16 MXU matmul (f32 accumulate).
    out = jnp.zeros((Cout, P), jnp.float32)
    for c in range(C):
        out = out + y[c:c + 1, :] * pwc_ref[c]                          # (Cout,P)
    o_ref[...] = out.astype(o_ref.dtype)


@jax.jit
def separable_conv2d(x_nchw, dw, pw, gamma, beta):
    """Forward pass of SeparableConv2d.

    x_nchw: (N, C, H, W)     float32 (PyTorch NCHW convention)
    dw:     (C, 1, 3, 3)     depthwise conv weight (groups=C, bias=False)
    pw:     (Cout, C, 1, 1)  pointwise conv weight (bias=False)
    gamma:  (C,)             BN weight
    beta:   (C,)             BN bias
    returns (N, Cout, H, W)
    """
    N, C, H, W = x_nchw.shape
    Cout = pw.shape[0]
    P = N * H * W

    # Layout plumbing (one XLA transpose each way): channel-major with all
    # spatial positions flattened onto the lane axis.
    x_cm = jnp.transpose(x_nchw, (1, 0, 2, 3)).reshape(C, P).astype(jnp.float32)

    # Per-tap depthwise weights with the zero-padding mask folded in:
    # wtap[t, c, p] = dw[c, kh, kw] if the 3x3 window stays inside the image
    # at flat position p, else 0.  Mask is a host-side (numpy) constant.
    pos = np.arange(P)
    hh = (pos // W) % H
    ww = pos % W
    mask = np.stack([
        ((hh + kh - 1 >= 0) & (hh + kh - 1 < H) &
         (ww + kw - 1 >= 0) & (ww + kw - 1 < W)).astype(np.float32)
        for kh in range(3) for kw in range(3)])                        # (9, P)
    dw_t = dw[:, 0].reshape(C, 9).T.astype(jnp.float32)                # (9, C)
    wtap = dw_t[:, :, None] * jnp.asarray(mask)[:, None, :]            # (9, C, P)

    # Lane-roll amount per tap: output position p reads x[p + (kh-1)*W + (kw-1)].
    shifts = tuple(int((-((kh - 1) * W + (kw - 1))) % P)
                   for kh in range(3) for kw in range(3))

    pwc = pw[:, :, 0, 0].T.reshape(C, Cout, 1).astype(jnp.float32)     # (C,Cout,1)
    gamma_k = gamma.reshape(C, 1).astype(jnp.float32)
    beta_k = beta.reshape(C, 1).astype(jnp.float32)

    flops = P * C * (9 * 2 + 6) + P * C * Cout * 2
    bytes_accessed = 4 * (10 * C * P + Cout * P + C * Cout + 2 * C)

    out_cm = pl.pallas_call(
        functools.partial(_sepconv_kernel, shifts=shifts),
        grid=(1,),
        in_specs=[
            pl.BlockSpec((C, P), lambda i: (0, 0)),
            pl.BlockSpec((9, C, P), lambda i: (0, 0, 0)),
            pl.BlockSpec((C, Cout, 1), lambda i: (0, 0, 0)),
            pl.BlockSpec((C, 1), lambda i: (0, 0)),
            pl.BlockSpec((C, 1), lambda i: (0, 0)),
        ],
        out_specs=pl.BlockSpec((Cout, P), lambda i: (0, 0)),
        out_shape=jax.ShapeDtypeStruct((Cout, P), jnp.float32),
        compiler_params=pltpu.CompilerParams(
            dimension_semantics=("arbitrary",),
            vmem_limit_bytes=_vmem_limit_bytes()),
        cost_estimate=pl.CostEstimate(
            flops=flops, transcendentals=C, bytes_accessed=bytes_accessed),
    )(x_cm, wtap, pwc, gamma_k, beta_k)

    # Back to PyTorch NCHW for spec parity with the nn.Module output.
    return jnp.transpose(out_cm.reshape(Cout, N, H, W), (1, 0, 2, 3))


def reference(x_nchw, dw, pw, gamma, beta):
    """Pure-JAX reference matching the PyTorch forward (training-mode BN)."""
    y = jax.lax.conv_general_dilated(
        x_nchw, dw, window_strides=(1, 1), padding=((1, 1), (1, 1)),
        dimension_numbers=("NCHW", "OIHW", "NCHW"),
        feature_group_count=x_nchw.shape[1])
    mean = y.mean(axis=(0, 2, 3), keepdims=True)
    var = ((y - mean) ** 2).mean(axis=(0, 2, 3), keepdims=True)
    y = (y - mean) / jnp.sqrt(var + EPS)
    y = y * gamma.reshape(1, -1, 1, 1) + beta.reshape(1, -1, 1, 1)
    return jax.lax.conv_general_dilated(
        y, pw, window_strides=(1, 1), padding="VALID",
        dimension_numbers=("NCHW", "OIHW", "NCHW"))


if __name__ == "__main__":
    key = jax.random.PRNGKey(0)
    kx, kd, kp, kg, kb = jax.random.split(key, 5)

    N, C, H, W, Cout = 2, 4, 16, 16, 8  # inplanes=4, planes=8
    x = jax.random.normal(kx, (N, C, H, W), jnp.float32)
    dw = 0.2 * jax.random.normal(kd, (C, 1, 3, 3), jnp.float32)     # conv1.weight
    pw = 0.2 * jax.random.normal(kp, (Cout, C, 1, 1), jnp.float32)  # pointwise.weight
    gamma = 1.0 + 0.1 * jax.random.normal(kg, (C,), jnp.float32)    # bn.weight
    beta = 0.1 * jax.random.normal(kb, (C,), jnp.float32)           # bn.bias

    out = jax.block_until_ready(separable_conv2d(x, dw, pw, gamma, beta))

    ref = reference(x, dw, pw, gamma, beta)
    assert out.shape == (N, Cout, H, W), out.shape
    max_err = float(jnp.max(jnp.abs(out - ref)))
    assert jnp.allclose(out, ref, atol=1e-4, rtol=1e-4), max_err

    print("KERNEL_OK")
</pallas_src>

<mosaic_0001>
module attributes {stable_mosaic.version = 11 : i64} {
  func.func @_sepconv_kernel(%arg0: i32, %arg1: memref<4x512xf32, #tpu.memory_space<vmem>>, %arg2: memref<9x4x512xf32, #tpu.memory_space<vmem>>, %arg3: memref<4x8x1xf32, #tpu.memory_space<vmem>>, %arg4: memref<4x1xf32, #tpu.memory_space<vmem>>, %arg5: memref<4x1xf32, #tpu.memory_space<vmem>>, %arg6: memref<8x512xf32, #tpu.memory_space<vmem>>) attributes {dimension_semantics = [#tpu.dimension_semantics<arbitrary>], iteration_bounds = array<i64: 1>, scalar_prefetch = 0 : i64, scratch_operands = 0 : i64, tpu.core_type = #tpu.core_type<tc>, window_params = [{pipeline_mode = #tpu.pipeline_mode<synchronous>, transform_indices = @transform_0, window_bounds = array<i64: 4, 512>}, {pipeline_mode = #tpu.pipeline_mode<synchronous>, transform_indices = @transform_1, window_bounds = array<i64: 9, 4, 512>}, {pipeline_mode = #tpu.pipeline_mode<synchronous>, transform_indices = @transform_2, window_bounds = array<i64: 4, 8, 1>}, {pipeline_mode = #tpu.pipeline_mode<synchronous>, transform_indices = @transform_3, window_bounds = array<i64: 4, 1>}, {pipeline_mode = #tpu.pipeline_mode<synchronous>, transform_indices = @transform_4, window_bounds = array<i64: 4, 1>}, {pipeline_mode = #tpu.pipeline_mode<synchronous>, transform_indices = @transform_5, window_bounds = array<i64: 8, 512>}]} {
    %c0 = arith.constant 0 : index
    %c0_0 = arith.constant 0 : index
    %0 = vector.load %arg1[%c0, %c0_0] : memref<4x512xf32, #tpu.memory_space<vmem>>, vector<4x512xf32>
    %cst = arith.constant 0.000000e+00 : f32
    %1 = vector.broadcast %cst : f32 to vector<4x512xf32>
    %c17_i32 = arith.constant 17 : i32
    %2 = tpu.dynamic_rotate %0 by %c17_i32 dim 1 : vector<4x512xf32>, i32 -> vector<4x512xf32>
    %c0_1 = arith.constant 0 : index
    %c0_2 = arith.constant 0 : index
    %c0_3 = arith.constant 0 : index
    %3 = vector.load %arg2[%c0_1, %c0_2, %c0_3] : memref<9x4x512xf32, #tpu.memory_space<vmem>>, vector<1x4x512xf32>
    %4 = vector.shape_cast %3 : vector<1x4x512xf32> to vector<4x512xf32>
    %5 = arith.mulf %2, %4 : vector<4x512xf32>
    %6 = arith.addf %1, %5 : vector<4x512xf32>
    %c16_i32 = arith.constant 16 : i32
    %7 = tpu.dynamic_rotate %0 by %c16_i32 dim 1 : vector<4x512xf32>, i32 -> vector<4x512xf32>
    %c1 = arith.constant 1 : index
    %c0_4 = arith.constant 0 : index
    %c0_5 = arith.constant 0 : index
    %8 = vector.load %arg2[%c1, %c0_4, %c0_5] : memref<9x4x512xf32, #tpu.memory_space<vmem>>, vector<1x4x512xf32>
    %9 = vector.shape_cast %8 : vector<1x4x512xf32> to vector<4x512xf32>
    %10 = arith.mulf %7, %9 : vector<4x512xf32>
    %11 = arith.addf %6, %10 : vector<4x512xf32>
    %c15_i32 = arith.constant 15 : i32
    %12 = tpu.dynamic_rotate %0 by %c15_i32 dim 1 : vector<4x512xf32>, i32 -> vector<4x512xf32>
    %c2 = arith.constant 2 : index
    %c0_6 = arith.constant 0 : index
    %c0_7 = arith.constant 0 : index
    %13 = vector.load %arg2[%c2, %c0_6, %c0_7] : memref<9x4x512xf32, #tpu.memory_space<vmem>>, vector<1x4x512xf32>
    %14 = vector.shape_cast %13 : vector<1x4x512xf32> to vector<4x512xf32>
    %15 = arith.mulf %12, %14 : vector<4x512xf32>
    %16 = arith.addf %11, %15 : vector<4x512xf32>
    %c1_i32 = arith.constant 1 : i32
    %17 = tpu.dynamic_rotate %0 by %c1_i32 dim 1 : vector<4x512xf32>, i32 -> vector<4x512xf32>
    %c3 = arith.constant 3 : index
    %c0_8 = arith.constant 0 : index
    %c0_9 = arith.constant 0 : index
    %18 = vector.load %arg2[%c3, %c0_8, %c0_9] : memref<9x4x512xf32, #tpu.memory_space<vmem>>, vector<1x4x512xf32>
    %19 = vector.shape_cast %18 : vector<1x4x512xf32> to vector<4x512xf32>
    %20 = arith.mulf %17, %19 : vector<4x512xf32>
    %21 = arith.addf %16, %20 : vector<4x512xf32>
    %c4 = arith.constant 4 : index
    %c0_10 = arith.constant 0 : index
    %c0_11 = arith.constant 0 : index
    %22 = vector.load %arg2[%c4, %c0_10, %c0_11] : memref<9x4x512xf32, #tpu.memory_space<vmem>>, vector<1x4x512xf32>
    %23 = vector.shape_cast %22 : vector<1x4x512xf32> to vector<4x512xf32>
    %24 = arith.mulf %0, %23 : vector<4x512xf32>
    %25 = arith.addf %21, %24 : vector<4x512xf32>
    %c511_i32 = arith.constant 511 : i32
    %26 = tpu.dynamic_rotate %0 by %c511_i32 dim 1 : vector<4x512xf32>, i32 -> vector<4x512xf32>
    %c5 = arith.constant 5 : index
    %c0_12 = arith.constant 0 : index
    %c0_13 = arith.constant 0 : index
    %27 = vector.load %arg2[%c5, %c0_12, %c0_13] : memref<9x4x512xf32, #tpu.memory_space<vmem>>, vector<1x4x512xf32>
    %28 = vector.shape_cast %27 : vector<1x4x512xf32> to vector<4x512xf32>
    %29 = arith.mulf %26, %28 : vector<4x512xf32>
    %30 = arith.addf %25, %29 : vector<4x512xf32>
    %c497_i32 = arith.constant 497 : i32
    %31 = tpu.dynamic_rotate %0 by %c497_i32 dim 1 : vector<4x512xf32>, i32 -> vector<4x512xf32>
    %c6 = arith.constant 6 : index
    %c0_14 = arith.constant 0 : index
    %c0_15 = arith.constant 0 : index
    %32 = vector.load %arg2[%c6, %c0_14, %c0_15] : memref<9x4x512xf32, #tpu.memory_space<vmem>>, vector<1x4x512xf32>
    %33 = vector.shape_cast %32 : vector<1x4x512xf32> to vector<4x512xf32>
    %34 = arith.mulf %31, %33 : vector<4x512xf32>
    %35 = arith.addf %30, %34 : vector<4x512xf32>
    %c496_i32 = arith.constant 496 : i32
    %36 = tpu.dynamic_rotate %0 by %c496_i32 dim 1 : vector<4x512xf32>, i32 -> vector<4x512xf32>
    %c7 = arith.constant 7 : index
    %c0_16 = arith.constant 0 : index
    %c0_17 = arith.constant 0 : index
    %37 = vector.load %arg2[%c7, %c0_16, %c0_17] : memref<9x4x512xf32, #tpu.memory_space<vmem>>, vector<1x4x512xf32>
    %38 = vector.shape_cast %37 : vector<1x4x512xf32> to vector<4x512xf32>
    %39 = arith.mulf %36, %38 : vector<4x512xf32>
    %40 = arith.addf %35, %39 : vector<4x512xf32>
    %c495_i32 = arith.constant 495 : i32
    %41 = tpu.dynamic_rotate %0 by %c495_i32 dim 1 : vector<4x512xf32>, i32 -> vector<4x512xf32>
    %c8 = arith.constant 8 : index
    %c0_18 = arith.constant 0 : index
    %c0_19 = arith.constant 0 : index
    %42 = vector.load %arg2[%c8, %c0_18, %c0_19] : memref<9x4x512xf32, #tpu.memory_space<vmem>>, vector<1x4x512xf32>
    %43 = vector.shape_cast %42 : vector<1x4x512xf32> to vector<4x512xf32>
    %44 = arith.mulf %41, %43 : vector<4x512xf32>
    %45 = arith.addf %40, %44 : vector<4x512xf32>
    %cst_20 = arith.constant dense<0.000000e+00> : vector<4xf32>
    %46 = vector.multi_reduction <add>, %45, %cst_20 [1] : vector<4x512xf32> to vector<4xf32>
    %47 = vector.shape_cast %46 : vector<4xf32> to vector<4x1xf32>
    %cst_21 = arith.constant 0.001953125 : f32
    %48 = vector.broadcast %cst_21 : f32 to vector<4x1xf32>
    %49 = arith.mulf %47, %48 : vector<4x1xf32>
    %50 = vector.broadcast %49 : vector<4x1xf32> to vector<4x512xf32>
    %51 = arith.subf %45, %50 : vector<4x512xf32>
    %52 = arith.mulf %51, %51 : vector<4x512xf32>
    %cst_22 = arith.constant dense<0.000000e+00> : vector<4xf32>
    %53 = vector.multi_reduction <add>, %52, %cst_22 [1] : vector<4x512xf32> to vector<4xf32>
    %54 = vector.shape_cast %53 : vector<4xf32> to vector<4x1xf32>
    %cst_23 = arith.constant 0.001953125 : f32
    %55 = vector.broadcast %cst_23 : f32 to vector<4x1xf32>
    %56 = arith.mulf %54, %55 : vector<4x1xf32>
    %c0_24 = arith.constant 0 : index
    %c0_25 = arith.constant 0 : index
    %57 = vector.load %arg4[%c0_24, %c0_25] : memref<4x1xf32, #tpu.memory_space<vmem>>, vector<4x1xf32>
    %cst_26 = arith.constant 9.99999974E-6 : f32
    %58 = vector.broadcast %cst_26 : f32 to vector<4x1xf32>
    %59 = arith.addf %56, %58 : vector<4x1xf32>
    %60 = math.rsqrt %59 : vector<4x1xf32>
    %61 = arith.mulf %57, %60 : vector<4x1xf32>
    %c0_27 = arith.constant 0 : index
    %c0_28 = arith.constant 0 : index
    %62 = vector.load %arg5[%c0_27, %c0_28] : memref<4x1xf32, #tpu.memory_space<vmem>>, vector<4x1xf32>
    %63 = arith.mulf %49, %61 : vector<4x1xf32>
    %64 = arith.subf %62, %63 : vector<4x1xf32>
    %65 = vector.broadcast %61 : vector<4x1xf32> to vector<4x512xf32>
    %66 = arith.mulf %45, %65 : vector<4x512xf32>
    %67 = vector.broadcast %64 : vector<4x1xf32> to vector<4x512xf32>
    %68 = arith.addf %66, %67 : vector<4x512xf32>
    %cst_29 = arith.constant 0.000000e+00 : f32
    %69 = vector.broadcast %cst_29 : f32 to vector<8x512xf32>
    %70 = vector.extract_strided_slice %68 {offsets = [0, 0], sizes = [1, 512], strides = [1, 1]} : vector<4x512xf32> to vector<1x512xf32>
    %c0_30 = arith.constant 0 : index
    %c0_31 = arith.constant 0 : index
    %c0_32 = arith.constant 0 : index
    %71 = vector.load %arg3[%c0_30, %c0_31, %c0_32] : memref<4x8x1xf32, #tpu.memory_space<vmem>>, vector<1x8x1xf32>
    %72 = vector.shape_cast %71 : vector<1x8x1xf32> to vector<8x1xf32>
    %73 = vector.broadcast %70 : vector<1x512xf32> to vector<8x512xf32>
    %74 = vector.broadcast %72 : vector<8x1xf32> to vector<8x512xf32>
    %75 = arith.mulf %73, %74 : vector<8x512xf32>
    %76 = arith.addf %69, %75 : vector<8x512xf32>
    %77 = vector.extract_strided_slice %68 {offsets = [1, 0], sizes = [1, 512], strides = [1, 1]} : vector<4x512xf32> to vector<1x512xf32>
    %c1_33 = arith.constant 1 : index
    %c0_34 = arith.constant 0 : index
    %c0_35 = arith.constant 0 : index
    %78 = vector.load %arg3[%c1_33, %c0_34, %c0_35] : memref<4x8x1xf32, #tpu.memory_space<vmem>>, vector<1x8x1xf32>
    %79 = vector.shape_cast %78 : vector<1x8x1xf32> to vector<8x1xf32>
    %80 = vector.broadcast %77 : vector<1x512xf32> to vector<8x512xf32>
    %81 = vector.broadcast %79 : vector<8x1xf32> to vector<8x512xf32>
    %82 = arith.mulf %80, %81 : vector<8x512xf32>
    %83 = arith.addf %76, %82 : vector<8x512xf32>
    %84 = vector.extract_strided_slice %68 {offsets = [2, 0], sizes = [1, 512], strides = [1, 1]} : vector<4x512xf32> to vector<1x512xf32>
    %c2_36 = arith.constant 2 : index
    %c0_37 = arith.constant 0 : index
    %c0_38 = arith.constant 0 : index
    %85 = vector.load %arg3[%c2_36, %c0_37, %c0_38] : memref<4x8x1xf32, #tpu.memory_space<vmem>>, vector<1x8x1xf32>
    %86 = vector.shape_cast %85 : vector<1x8x1xf32> to vector<8x1xf32>
    %87 = vector.broadcast %84 : vector<1x512xf32> to vector<8x512xf32>
    %88 = vector.broadcast %86 : vector<8x1xf32> to vector<8x512xf32>
    %89 = arith.mulf %87, %88 : vector<8x512xf32>
    %90 = arith.addf %83, %89 : vector<8x512xf32>
    %91 = vector.extract_strided_slice %68 {offsets = [3, 0], sizes = [1, 512], strides = [1, 1]} : vector<4x512xf32> to vector<1x512xf32>
    %c3_39 = arith.constant 3 : index
    %c0_40 = arith.constant 0 : index
    %c0_41 = arith.constant 0 : index
    %92 = vector.load %arg3[%c3_39, %c0_40, %c0_41] : memref<4x8x1xf32, #tpu.memory_space<vmem>>, vector<1x8x1xf32>
    %93 = vector.shape_cast %92 : vector<1x8x1xf32> to vector<8x1xf32>
    %94 = vector.broadcast %91 : vector<1x512xf32> to vector<8x512xf32>
    %95 = vector.broadcast %93 : vector<8x1xf32> to vector<8x512xf32>
    %96 = arith.mulf %94, %95 : vector<8x512xf32>
    %97 = arith.addf %90, %96 : vector<8x512xf32>
    %c0_42 = arith.constant 0 : index
    %c0_43 = arith.constant 0 : index
    %98 = vector.load %arg6[%c0_42, %c0_43] : memref<8x512xf32, #tpu.memory_space<vmem>>, vector<8x512xf32>
    tpu.vector_store %arg6[%c0_42, %c0_43], %97 {strides = array<i32>} : memref<8x512xf32, #tpu.memory_space<vmem>>, vector<8x512xf32>,
    return
  }
  func.func @transform_0(%arg0: i32) -> (i32, i32) {
    %c0_i32 = arith.constant 0 : i32
    %c0_i32_0 = arith.constant 0 : i32
    %c0_i32_1 = arith.constant 0 : i32
    return %c0_i32, %c0_i32_0 : i32, i32
  }
  func.func @transform_1(%arg0: i32) -> (i32, i32, i32) {
    %c0_i32 = arith.constant 0 : i32
    %c0_i32_0 = arith.constant 0 : i32
    %c0_i32_1 = arith.constant 0 : i32
    %c0_i32_2 = arith.constant 0 : i32
    return %c0_i32, %c0_i32_0, %c0_i32_1 : i32, i32, i32
  }
  func.func @transform_2(%arg0: i32) -> (i32, i32, i32) {
    %c0_i32 = arith.constant 0 : i32
    %c0_i32_0 = arith.constant 0 : i32
    %c0_i32_1 = arith.constant 0 : i32
    %c0_i32_2 = arith.constant 0 : i32
    return %c0_i32, %c0_i32_0, %c0_i32_1 : i32, i32, i32
  }
  func.func @transform_3(%arg0: i32) -> (i32, i32) {
    %c0_i32 = arith.constant 0 : i32
    %c0_i32_0 = arith.constant 0 : i32
    %c0_i32_1 = arith.constant 0 : i32
    return %c0_i32, %c0_i32_0 : i32, i32
  }
  func.func @transform_4(%arg0: i32) -> (i32, i32) {
    %c0_i32 = arith.constant 0 : i32
    %c0_i32_0 = arith.constant 0 : i32
    %c0_i32_1 = arith.constant 0 : i32
    return %c0_i32, %c0_i32_0 : i32, i32
  }
  func.func @transform_5(%arg0: i32) -> (i32, i32) {
    %c0_i32 = arith.constant 0 : i32
    %c0_i32_0 = arith.constant 0 : i32
    %c0_i32_1 = arith.constant 0 : i32
    return %c0_i32, %c0_i32_0 : i32, i32
  }
}

</mosaic_0001>

<bundles_post_ra>
// kernel: separable_conv2d.1
= control target key start
LH: loop header
LB: loop body
LE: loop exit
PB: predicated region body
PF: predicated region fallthrough
CT: control target
= control target key end

     0   :  { %s519_s22 = smov 16   ;;  %s520_s23 = smov 17   ;;  %v36_v16 = vlaneseq  ;;  %vm284_vm8 = vcmask 1043456   ;;  %s843_s0 = inlined_call_operand.vmem [shape: f32[4,512], index: 0, kind: input, shape index: {}]   ;;  %s844_s1 = inlined_call_operand.vmem [shape: f32[9,4,512], index: 1, kind: input, shape index: {}]   ;;  %s845_s2 = inlined_call_operand.vmem [shape: f32[4,8,1], index: 2, kind: input, shape index: {}]   ;;  %s846_s3 = inlined_call_operand.vmem [shape: f32[4,1], index: 3, kind: input, shape index: {}]   ;;  %s847_s4 = inlined_call_operand.vmem [shape: f32[4,1], index: 4, kind: input, shape index: {}]   ;;  %s848_s5 = inlined_call_operand.vmem [shape: f32[8,512], index: 5, kind: output, shape index: {}]  }
   0x1   :  { %v561_v0 = vld [vmem:[%s843_s0] sm:$0xff]  ;;  %v566_v1 = vld [vmem:[%s843_s0 + $0x8] sm:$0xff]  ;;  %s521_s0 = smov 15   ;;  %s522_s24 = smov 1   ;;  %v469_v24 = vld [vmem:[%s844_s1 + $0x10] sm:$0xff] }
   0x2   :  { %59 = vrot.lane.b32.xlu1 %v561_v0, %s519_s22  ;;  %28 = vrot.lane.b32.xlu0 %v561_v0, %s520_s23  ;;  %v25_v2 = vcombine.high %v566_v1, %v566_v1  ;;  %v24_v3 = vcombine.high %v561_v0, %v561_v0  ;;  %s523_s25 = smov 127   ;;  %s524_s26 = smov 113   ;;  %v597_v19 = vand.u32 127, %v36_v16  ;;  %v43_v22 = vld [vmem:[%s844_s1] sm:$0xff]  ;;  %v470_v25 = vld [vmem:[%s844_s1 + $0x18] sm:$0xff]  ;;  %v77_v35 = vcombine.high %v469_v24, %v469_v24 }
   0x3   :  { %s525_s27 = smov 112   ;;  %s526_s28 = smov 111   ;;  %v475_v23 = vld [vmem:[%s844_s1 + $0x40] sm:$0xff]  ;;  %v44_v26 = vld [vmem:[%s844_s1 + $0x8] sm:$0xff]  ;;  %v473_v29 = vld [vmem:[%s844_s1 + $0x30] sm:$0xff]  ;;  %v47_v34 = vcombine.high %v43_v22, %v43_v22  ;;  %v78_v36 = vcombine.high %v470_v25, %v470_v25 }
   0x4   :  { %v471_v27 = vld [vmem:[%s844_s1 + $0x20] sm:$0xff]  ;;  %v472_v28 = vld [vmem:[%s844_s1 + $0x28] sm:$0xff]  ;;  %vm38_vm0 = vcmp.lt.s32.totalorder %v597_v19, 17  ;;  %vm67_vm1 = vcmp.lt.s32.totalorder %v597_v19, 16  ;;  %v632_v30 = vld [vmem:[%s844_s1 + $0x38] sm:$0xff]  ;;  %v637_v32 = vmul.f32 %v475_v23, %v561_v0  ;;  %v48_v37 = vcombine.high %v44_v26, %v44_v26 }
   0x5   :  { %v476_v38 = vld [vmem:[%s844_s1 + $0x48] sm:$0xff]  ;;  %vm97_vm2 = vcmp.lt.s32.totalorder %v597_v19, 15  ;;  %v107_v39 = vcombine.high %v471_v27, %v471_v27  ;;  %v108_v40 = vcombine.high %v472_v28, %v472_v28  ;;  %vm127_vm3 = vcmp.lt.s32.totalorder %v597_v19, 1 }
   0x6   :  { %34 = vrot.lane.b32.xlu1 %v25_v2, %s520_s23  ;;  %30 = vrot.lane.b32.xlu0 %v24_v3, %s520_s23  ;;  %v137_v43 = vcombine.high %v473_v29, %v473_v29  ;;  %v138_v44 = vcombine.high %v632_v30, %v632_v30  ;;  %v657_v47 = vmul.f32 %v476_v38, %v566_v1  ;;  %vm172_vm4 = vcmp.lt.s32.totalorder %v597_v19, 127 }
   0x7   :  { %v156_v49 = vcombine.high %v637_v32, %v637_v32  ;;  %vm202_vm5 = vcmp.lt.s32.totalorder %v597_v19, 113  ;;  %vm232_vm6 = vcmp.lt.s32.totalorder %v597_v19, 112  ;;  %vm262_vm7 = vcmp.lt.s32.totalorder %v597_v19, 111 }
   0xa   :  { %65 = vrot.lane.b32.xlu1 %v25_v2, %s519_s22  ;;  %61 = vrot.lane.b32.xlu0 %v24_v3, %s519_s22 }
   0xe   :  { %63 = vrot.lane.b32.xlu1 %v566_v1, %s519_s22  ;;  %32 = vrot.lane.b32.xlu0 %v566_v1, %s520_s23 }
  0x12   :  { %91 = vrot.lane.b32.xlu1 %v24_v3, %s521_s0  ;;  %89 = vrot.lane.b32.xlu0 %v561_v0, %s521_s0 }
  0x16   :  { %93 = vrot.lane.b32.xlu1 %v566_v1, %s521_s0  ;;  %95 = vrot.lane.b32.xlu0 %v25_v2, %s521_s0 }
  0x1a   :  { %121 = vrot.lane.b32.xlu1 %v24_v3, %s522_s24  ;;  %119 = vrot.lane.b32.xlu0 %v561_v0, %s522_s24 }
  0x1e   :  { %123 = vrot.lane.b32.xlu1 %v566_v1, %s522_s24  ;;  %125 = vrot.lane.b32.xlu0 %v25_v2, %s522_s24 }
  0x22   :  { %166 = vrot.lane.b32.xlu1 %v24_v3, %s523_s25  ;;  %164 = vrot.lane.b32.xlu0 %v561_v0, %s523_s25 }
  0x26   :  { %170 = vrot.lane.b32.xlu1 %v25_v2, %s523_s25  ;;  %168 = vrot.lane.b32.xlu0 %v566_v1, %s523_s25 }
  0x2a   :  { %196 = vrot.lane.b32.xlu1 %v24_v3, %s524_s26  ;;  %194 = vrot.lane.b32.xlu0 %v561_v0, %s524_s26 }
  0x2e   :  { %200 = vrot.lane.b32.xlu1 %v25_v2, %s524_s26  ;;  %198 = vrot.lane.b32.xlu0 %v566_v1, %s524_s26 }
  0x32   :  { %226 = vrot.lane.b32.xlu1 %v24_v3, %s525_s27  ;;  %224 = vrot.lane.b32.xlu0 %v561_v0, %s525_s27 }
  0x36   :  { %230 = vrot.lane.b32.xlu1 %v25_v2, %s525_s27  ;;  %228 = vrot.lane.b32.xlu0 %v566_v1, %s525_s27 }
  0x3a   :  { %256 = vrot.lane.b32.xlu1 %v24_v3, %s526_s28  ;;  %254 = vrot.lane.b32.xlu0 %v561_v0, %s526_s28 }
  0x3e   :  { %260 = vrot.lane.b32.xlu1 %v25_v2, %s526_s28  ;;  %258 = vrot.lane.b32.xlu0 %v566_v1, %s526_s28  ;;  %v686_v2 = vld [vmem:[%s844_s1 + $0x58] sm:$0xff] }
  0x74   :  { %v60_v4 = vpop.permute.xlu1 %59  ;;  %v29_v5 = vpop.permute.xlu0 %28 }
  0x78   :  { %v35_v6 = vpop.permute.xlu1 %34  ;;  %v31_v7 = vpop.permute.xlu0 %30 }
  0x79   :  { %v42_v41 = vsel %vm38_vm0, %v35_v6, %v29_v5  ;;  %v41_v45 = vsel %vm38_vm0, %v29_v5, %v31_v7 }
  0x7a   :  { %v51_v55 = vmul.f32 %v43_v22, %v42_v41  ;;  %v52_v58 = vmul.f32 %v47_v34, %v41_v45 }
  0x7c   :  { %v66_v8 = vpop.permute.xlu1 %65  ;;  %v62_v9 = vpop.permute.xlu0 %61 }
  0x7d   :  { %v71_v42 = vsel %vm67_vm1, %v66_v8, %v60_v4  ;;  %v70_v46 = vsel %vm67_vm1, %v60_v4, %v62_v9 }
  0x7e   :  { %v81_v56 = vmul.f32 %v469_v24, %v71_v42  ;;  %v82_v59 = vmul.f32 %v77_v35, %v70_v46 }
  0x80   :  { %v64_v10 = vpop.permute.xlu1 %63  ;;  %v33_v11 = vpop.permute.xlu0 %32  ;;  %v86_v22 = vadd.f32 %v82_v59, %v52_v58 }
  0x81   :  { %v68_v51 = vsel %vm67_vm1, %v64_v10, %v66_v8  ;;  %v69_v52 = vsel %vm67_vm1, %v62_v9, %v64_v10  ;;  %v40_v53 = vsel %vm38_vm0, %v31_v7, %v33_v11  ;;  %v39_v57 = vsel %vm38_vm0, %v33_v11, %v35_v6 }
  0x82   :  { %v83_v62 = vmul.f32 %v470_v25, %v69_v52  ;;  %v84_v63 = vmul.f32 %v78_v36, %v68_v51  ;;  %v53_v0 = vmul.f32 %v44_v26, %v40_v53  ;;  %v54_v5 = vmul.f32 %v48_v37, %v39_v57  ;;  %v477_v26 = vld [vmem:[%s844_s1 + $0x50] sm:$0xff] }
  0x83   :  { %v85_v9 = vadd.f32 %v81_v56, %v51_v55  ;;  %v182_v34 = vcombine.high %v477_v26, %v477_v26  ;;  %v481_v52 = vld [vmem:[%s844_s1 + $0x70] sm:$0xff] }
  0x84   :  { %v588_v12 = vpop.permute.xlu1 %91  ;;  %v90_v13 = vpop.permute.xlu0 %89  ;;  %v242_v55 = vcombine.high %v481_v52, %v481_v52 }
  0x85   :  { %v100_v60 = vsel %vm97_vm2, %v90_v13, %v588_v12 }
  0x86   :  { %v112_v10 = vmul.f32 %v107_v39, %v100_v60  ;;  %v479_v39 = vld [vmem:[%s844_s1 + $0x60] sm:$0xff] }
  0x87   :  { %v212_v42 = vcombine.high %v479_v39, %v479_v39 }
  0x88   :  { %v590_v14 = vpop.permute.xlu1 %93  ;;  %v592_v15 = vpop.permute.xlu0 %95  ;;  %v116_v35 = vadd.f32 %v112_v10, %v86_v22 }
  0x89   :  { %v101_v54 = vsel %vm97_vm2, %v592_v15, %v90_v13  ;;  %v99_v6 = vsel %vm97_vm2, %v588_v12, %v590_v14  ;;  %v98_v7 = vsel %vm97_vm2, %v590_v14, %v592_v15  ;;  %v157_v13 = vcombine.high %v657_v47, %v657_v47 }
  0x8a   :  { %v111_v1 = vmul.f32 %v471_v27, %v101_v54  ;;  %v183_v15 = vcombine.high %v686_v2, %v686_v2  ;;  %v114_v23 = vmul.f32 %v108_v40, %v98_v7  ;;  %v732_v40 = vld [vmem:[%s844_s1 + $0x88] sm:$0xff] }
  0x8b   :  { %v273_v56 = vcombine.high %v732_v40, %v732_v40 }
  0x8c   :  { %v594_v17 = vpop.permute.xlu1 %121  ;;  %v120_v18 = vpop.permute.xlu0 %119  ;;  %v115_v24 = vadd.f32 %v111_v1, %v85_v9 }
  0x8d   :  { %v130_v8 = vsel %vm127_vm3, %v120_v18, %v594_v17 }
  0x8e   :  { %v142_v25 = vmul.f32 %v137_v43, %v130_v8 }
  0x90   :  { %v599_v20 = vpop.permute.xlu1 %123  ;;  %v601_v21 = vpop.permute.xlu0 %125 }
  0x91   :  { %v131_v61 = vsel %vm127_vm3, %v601_v21, %v120_v18  ;;  %v129_v12 = vsel %vm127_vm3, %v594_v17, %v599_v20  ;;  %v128_v14 = vsel %vm127_vm3, %v599_v20, %v601_v21  ;;  %v113_v18 = vmul.f32 %v472_v28, %v99_v6  ;;  %v480_v17 = vld [vmem:[%s844_s1 + $0x68] sm:$0xff]  ;;  %v722_v20 = vld [vmem:[%s844_s1 + $0x78] sm:$0xff] }
  0x92   :  { %v141_v11 = vmul.f32 %v473_v29, %v131_v61  ;;  %v87_v21 = vadd.f32 %v83_v62, %v53_v0  ;;  %v88_v28 = vadd.f32 %v84_v63, %v54_v5  ;;  %v143_v36 = vmul.f32 %v632_v30, %v129_v12  ;;  %v483_v0 = vld [vmem:[%s844_s1 + $0x80] sm:$0xff] }
  0x93   :  { %v144_v37 = vmul.f32 %v138_v44, %v128_v14  ;;  %v213_v41 = vcombine.high %v480_v17, %v480_v17  ;;  %v243_v43 = vcombine.high %v722_v20, %v722_v20  ;;  %v146_v44 = vadd.f32 %v142_v25, %v116_v35 }
  0x94   :  { %v634_v31 = vpop.permute.xlu1 %166  ;;  %v639_v33 = vpop.permute.xlu0 %164  ;;  %v145_v38 = vadd.f32 %v141_v11, %v115_v24  ;;  %v117_v45 = vadd.f32 %v113_v18, %v87_v21  ;;  %v118_v30 = vadd.f32 %v114_v23, %v88_v28  ;;  %v272_v6 = vcombine.high %v483_v0, %v483_v0 }
  0x95   :  { %v175_v46 = vsel %vm172_vm4, %v639_v33, %v634_v31 }
  0x96   :  { %v147_v57 = vadd.f32 %v143_v36, %v117_v45  ;;  %v148_v58 = vadd.f32 %v144_v37, %v118_v30  ;;  %v160_v59 = vadd.f32 %v637_v32, %v145_v38  ;;  %v186_v61 = vmul.f32 %v477_v26, %v175_v46 }
  0x98   :  { %v659_v48 = vpop.permute.xlu1 %170  ;;  %v663_v50 = vpop.permute.xlu0 %168  ;;  %v190_v22 = vadd.f32 %v186_v61, %v160_v59  ;;  %v162_v12 = vadd.f32 %v657_v47, %v147_v57 }
  0x99   :  { %v174_v54 = vsel %vm172_vm4, %v634_v31, %v663_v50  ;;  %v173_v60 = vsel %vm172_vm4, %v663_v50, %v659_v48  ;;  %v176_v31 = vsel %vm172_vm4, %v659_v48, %v639_v33  ;;  %v161_v50 = vadd.f32 %v156_v49, %v146_v44 }
  0x9a   :  { %v187_v1 = vmul.f32 %v182_v34, %v174_v54  ;;  %v188_v7 = vmul.f32 %v686_v2, %v173_v60  ;;  %v189_v49 = vmul.f32 %v183_v15, %v176_v31  ;;  %v163_v2 = vadd.f32 %v157_v13, %v148_v58 }
  0x9c   :  { %v197_v3 = vpop.permute.xlu1 %196  ;;  %v688_v4 = vpop.permute.xlu0 %194  ;;  %v191_v14 = vadd.f32 %v187_v1, %v161_v50  ;;  %v192_v15 = vadd.f32 %v188_v7, %v162_v12  ;;  %v193_v28 = vadd.f32 %v189_v49, %v163_v2 }
  0x9d   :  { %v205_v62 = vsel %vm202_vm5, %v688_v4, %v197_v3 }
  0x9e   :  { %v216_v9 = vmul.f32 %v479_v39, %v205_v62 }
  0xa0   :  { %v201_v27 = vpop.permute.xlu1 %200  ;;  %v199_v29 = vpop.permute.xlu0 %198  ;;  %v220_v13 = vadd.f32 %v216_v9, %v190_v22  ;;  %v485_v22 = vld [vmem:[%s845_s2 + $0x8] sm:$0xff] }
  0xa1   :  { %v204_v63 = vsel %vm202_vm5, %v197_v3, %v199_v29  ;;  %v203_v5 = vsel %vm202_vm5, %v199_v29, %v201_v27  ;;  %v206_v3 = vsel %vm202_vm5, %v201_v27, %v688_v4 }
  0xa2   :  { %v217_v10 = vmul.f32 %v212_v42, %v204_v63  ;;  %v218_v4 = vmul.f32 %v480_v17, %v203_v5  ;;  %v219_v18 = vmul.f32 %v213_v41, %v206_v3 }
  0xa4   :  { %v227_v51 = vpop.permute.xlu1 %226  ;;  %v225_v53 = vpop.permute.xlu0 %224  ;;  %v221_v34 = vadd.f32 %v217_v10, %v191_v14  ;;  %v222_v17 = vadd.f32 %v218_v4, %v192_v15  ;;  %v223_v35 = vadd.f32 %v219_v18, %v193_v28  ;;  %v527_v10 = vmov 0   ;;  %v313_v14 = vld [vmem:[%s846_s3] sm:$0xf]  ;;  %v486_v15 = vld [vmem:[%s845_s2 + $0x10] sm:$0xff] }
  0xa5   :  { %v235_v8 = vsel %vm232_vm6, %v225_v53, %v227_v51  ;;  %498 = vset.pattern.permute.xlu1 %v527_v10  ;;  %497 = vset.pattern.permute.xlu0 %v527_v10 }
  0xa6   :  { %v246_v23 = vmul.f32 %v481_v52, %v235_v8 }
  0xa8   :  { %v231_v33 = vpop.permute.xlu1 %230  ;;  %v229_v48 = vpop.permute.xlu0 %228  ;;  %v250_v36 = vadd.f32 %v246_v23, %v220_v13 }
  0xa9   :  { %v234_v32 = vsel %vm232_vm6, %v227_v51, %v229_v48  ;;  %v233_v11 = vsel %vm232_vm6, %v229_v48, %v231_v33  ;;  %v236_v27 = vsel %vm232_vm6, %v231_v33, %v225_v53 }
  0xaa   :  { %v247_v24 = vmul.f32 %v242_v55, %v234_v32  ;;  %v248_v29 = vmul.f32 %v722_v20, %v233_v11  ;;  %v249_v37 = vmul.f32 %v243_v43, %v236_v27  ;;  %v338_v11 = vld [vmem:[%s845_s2] sm:$0xff]  ;;  %v487_v27 = vld [vmem:[%s845_s2 + $0x18] sm:$0xff] }
  0xac   :  { %v257_v25 = vpop.permute.xlu1 %256  ;;  %v255_v26 = vpop.permute.xlu0 %254  ;;  %v251_v38 = vadd.f32 %v247_v24, %v221_v34  ;;  %v252_v42 = vadd.f32 %v248_v29, %v222_v17  ;;  %v253_v43 = vadd.f32 %v249_v37, %v223_v35  ;;  %v317_v24 = vld [vmem:[%s847_s4] sm:$0xf] }
  0xad   :  { %v265_v21 = vsel %vm262_vm7, %v255_v26, %v257_v25 }
  0xae   :  { %v276_v47 = vmul.f32 %v483_v0, %v265_v21  ;;  %v340_v21 = vshrl.u32 %v36_v16, 7 }
  0xb0   :  { %v261_v39 = vpop.permute.xlu1 %260  ;;  %v259_v41 = vpop.permute.xlu0 %258  ;;  %v798_v44 = vadd.f32 %v276_v47, %v250_v36  ;;  %v403_v34 = vsub.s32 2, %v340_v21 }
  0xb1   :  { %v266_v45 = vsel %vm262_vm7, %v261_v39, %v255_v26  ;;  %v263_v20 = vsel %vm262_vm7, %v259_v41, %v261_v39  ;;  %v264_v30 = vsel %vm262_vm7, %v257_v25, %v259_v41 }
  0xb2   :  { %v279_v46 = vmul.f32 %v273_v56, %v266_v45  ;;  %v277_v51 = vmul.f32 %v272_v6, %v264_v30  ;;  %v278_v52 = vmul.f32 %v732_v40, %v263_v20  ;;  %v285_v57 = vsel %vm284_vm8, %v798_v44, 0.0 }
  0xb3   :  { %v372_v20 = vsub.s32 1, %v340_v21  ;;  %v434_v30 = vsub.s32 3, %v340_v21 }
  0xb4   :  { %v281_v53 = vadd.f32 %v277_v51, %v251_v38  ;;  %v282_v54 = vadd.f32 %v278_v52, %v252_v42  ;;  %v283_v55 = vadd.f32 %v279_v46, %v253_v43  ;;  %v341_v38 = vsub.s32 0, %v340_v21 }
  0xb6   :  { %v286_v58 = vsel %vm284_vm8, %v281_v53, 0.0  ;;  %v288_v19 = vsel %vm284_vm8, %v282_v54, 0.0  ;;  %v290_v61 = vsel %vm284_vm8, %v283_v55, 0.0 }
  0xb7   :  { %v287_v59 = vadd.f32 %v286_v58, %v285_v57 }
  0xb9   :  { %v289_v60 = vadd.f32 %v288_v19, %v287_v59 }
  0xbb   :  { %v291_v56 = vadd.f32 %v290_v61, %v289_v60 }
  0xbd   :  { %292 = vadd.xlane.f32.xlu0 %v291_v56 }
 0x14a   :  { %v293_v31 = vpop.xlane.xlu0 %292 }
 0x14b   :  { %v294_v40 = vmul.f32 0.001953125, %v293_v31 }
 0x14d   :  { %v295_v62 = vsub.f32 %v798_v44, %v294_v40  ;;  %v296_v63 = vsub.f32 %v281_v53, %v294_v40  ;;  %v297_v0 = vsub.f32 %v282_v54, %v294_v40  ;;  %v298_v50 = vsub.f32 %v283_v55, %v294_v40 }
 0x14f   :  { %v299_v1 = vmul.f32 %v295_v62, %v295_v62  ;;  %v300_v5 = vmul.f32 %v296_v63, %v296_v63  ;;  %v301_v33 = vmul.f32 %v297_v0, %v297_v0  ;;  %v302_v48 = vmul.f32 %v298_v50, %v298_v50 }
 0x151   :  { %v303_v6 = vsel %vm284_vm8, %v299_v1, 0.0  ;;  %v304_v7 = vsel %vm284_vm8, %v300_v5, 0.0  ;;  %v306_v8 = vsel %vm284_vm8, %v301_v33, 0.0  ;;  %v308_v49 = vsel %vm284_vm8, %v302_v48, 0.0 }
 0x152   :  { %v305_v3 = vadd.f32 %v304_v7, %v303_v6 }
 0x154   :  { %v307_v32 = vadd.f32 %v306_v8, %v305_v3 }
 0x156   :  { %v309_v9 = vadd.f32 %v308_v49, %v307_v32 }
 0x158   :  { %310 = vadd.xlane.f32.xlu1 %v309_v9 }
 0x169   :  { %357 = vperm.xlu1 %498, %v338_v11  }
 0x16d   :  { %388 = vperm.xlu1 %498, %v485_v22  }
 0x1e5   :  { %v311_v2 = vpop.xlane.xlu1 %310 }
 0x1e6   :  { %v312_v12 = vmul.f32 0.001953125, %v311_v2 }
 0x1e8   :  { %v314_v4 = vadd.f32 1e-05, %v312_v12 }
 0x1e9   :  { %v358_v29 = vpop.permute.xlu1 %357 }
 0x1ea   :  { %517 = vrsqrt.f32 %v314_v4 }
 0x1ed   :  { %v389_v28 = vpop.permute.xlu1 %388 }
 0x1f4   :  { %v518_v18 = vpop.eup %517 }
 0x1f5   :  { %v316_v23 = vmul.f32 %v518_v18, %v313_v14 }
 0x1f7   :  { %322 = vperm.xlu0 %497, %v316_v23   ;;  %v318_v25 = vmul.f32 %v316_v23, %v294_v40 }
 0x1f9   :  { %v319_v26 = vsub.f32 %v317_v24, %v318_v25 }
 0x1fb   :  { %331 = vperm.xlu1 %498, %v319_v26  }
 0x1ff   :  { %419 = vperm.xlu1 %498, %v486_v15  }
 0x203   :  { %450 = vperm.xlu1 %498, %v487_v27  }
 0x276   :  { %v323_v13 = vpop.permute.xlu0 %322 }
 0x277   :  { %v325_v47 = vmul.f32 %v323_v13, %v798_v44  ;;  %v326_v17 = vmul.f32 %v323_v13, %v281_v53  ;;  %v327_v35 = vmul.f32 %v323_v13, %v282_v54  ;;  %v328_v36 = vmul.f32 %v323_v13, %v283_v55 }
 0x27a   :  { %v332_v37 = vpop.permute.xlu1 %331 }
 0x27b   :  { %v334_v39 = vadd.f32 %v332_v37, %v325_v47  ;;  %v335_v41 = vadd.f32 %v332_v37, %v326_v17  ;;  %v336_v42 = vadd.f32 %v332_v37, %v327_v35  ;;  %v337_v45 = vadd.f32 %v332_v37, %v328_v36 }
 0x27d   :  { %v404_v46 = vrot.slane %v334_v39, %v403_v34  ;;  %v408_v51 = vrot.slane %v335_v41, %v403_v34  ;;  %v412_v52 = vrot.slane %v336_v42, %v403_v34  ;;  %v416_v16 = vrot.slane %v337_v45, %v403_v34 }
 0x27e   :  { %v420_v43 = vpop.permute.xlu1 %419  ;;  %v342_v57 = vrot.slane %v334_v39, %v341_v38  ;;  %v346_v58 = vrot.slane %v335_v41, %v341_v38  ;;  %v350_v59 = vrot.slane %v336_v42, %v341_v38  ;;  %v354_v44 = vrot.slane %v337_v45, %v341_v38 }
 0x27f   :  { %v422_v53 = vmul.f32 %v420_v43, %v404_v46  ;;  %v423_v54 = vmul.f32 %v420_v43, %v408_v51  ;;  %v424_v55 = vmul.f32 %v420_v43, %v412_v52  ;;  %v425_v19 = vmul.f32 %v420_v43, %v416_v16 }
 0x280   :  { %v360_v60 = vmul.f32 %v358_v29, %v342_v57  ;;  %v361_v61 = vmul.f32 %v358_v29, %v346_v58  ;;  %v362_v56 = vmul.f32 %v358_v29, %v350_v59  ;;  %v363_v31 = vmul.f32 %v358_v29, %v354_v44 }
 0x281   :  { %v373_v40 = vrot.slane %v334_v39, %v372_v20  ;;  %v377_v62 = vrot.slane %v335_v41, %v372_v20  ;;  %v381_v63 = vrot.slane %v336_v42, %v372_v20  ;;  %v385_v0 = vrot.slane %v337_v45, %v372_v20 }
 0x282   :  { %v435_v50 = vrot.slane %v334_v39, %v434_v30  ;;  %v439_v1 = vrot.slane %v335_v41, %v434_v30  ;;  %v443_v5 = vrot.slane %v336_v42, %v434_v30  ;;  %v447_v33 = vrot.slane %v337_v45, %v434_v30  ;;  %v451_v48 = vpop.permute.xlu1 %450 }
 0x283   :  { %v391_v6 = vmul.f32 %v389_v28, %v373_v40  ;;  %v392_v7 = vmul.f32 %v389_v28, %v377_v62  ;;  %v393_v3 = vmul.f32 %v389_v28, %v381_v63  ;;  %v394_v8 = vmul.f32 %v389_v28, %v385_v0 }
 0x284   :  { %v453_v32 = vmul.f32 %v451_v48, %v435_v50  ;;  %v454_v49 = vmul.f32 %v451_v48, %v439_v1  ;;  %v455_v9 = vmul.f32 %v451_v48, %v443_v5  ;;  %v456_v10 = vmul.f32 %v451_v48, %v447_v33 }
 0x285   :  { %v395_v11 = vadd.f32 %v391_v6, %v360_v60  ;;  %v396_v22 = vadd.f32 %v392_v7, %v361_v61  ;;  %v397_v2 = vadd.f32 %v393_v3, %v362_v56  ;;  %v398_v12 = vadd.f32 %v394_v8, %v363_v31 }
 0x287   :  { %v426_v4 = vadd.f32 %v422_v53, %v395_v11  ;;  %v427_v14 = vadd.f32 %v423_v54, %v396_v22  ;;  %v428_v18 = vadd.f32 %v424_v55, %v397_v2  ;;  %v429_v23 = vadd.f32 %v425_v19, %v398_v12 }
 0x289   :  { %v457_v24 = vadd.f32 %v453_v32, %v426_v4  ;;  %v458_v25 = vadd.f32 %v454_v49, %v427_v14  ;;  %v459_v26 = vadd.f32 %v455_v9, %v428_v18  ;;  %v460_v15 = vadd.f32 %v456_v10, %v429_v23 }
 0x28b   :  { %461 = vst [vmem:[%s848_s5] sm:$0xff] %v457_v24  ;;  %462 = vst [vmem:[%s848_s5 + $0x8] sm:$0xff] %v458_v25 }
 0x28c   :  { %463 = vst [vmem:[%s848_s5 + $0x10] sm:$0xff] %v459_v26  ;;  %464 = vst [vmem:[%s848_s5 + $0x18] sm:$0xff] %v460_v15 }

</bundles_post_ra>
